<compile_context>
chip_gen: v6e
topology: v6e:2x2x1
jax: 0.10.0
libtpu: 0.0.40
codegen_flags: <defaults>
</compile_context>

<pallas_src>
import numpy as np

import jax
import jax.numpy as jnp
from jax.experimental import pallas as pl
from jax.experimental.pallas import tpu as pltpu


def _round_up(x: int, m: int) -> int:
    return ((x + m - 1) // m) * m


def _tied_output_kernel(x_ref, w_ref, bias_ref, out_ref):
    """One (row-tile, vocab-tile) of the tied output projection.

    x_ref   : (tm, D)  decoder features (bf16)
    w_ref   : (D, tv)  slice of the (tied, pre-transposed) embedding table (bf16)
    bias_ref: (1, tv)  output bias slice (f32)
    out_ref : (tm, tv) vocab logits tile (f32 or bf16)
    """
    logits = jnp.dot(x_ref[...], w_ref[...], preferred_element_type=jnp.float32)
    out_ref[...] = (logits + bias_ref[...]).astype(out_ref.dtype)


def prepare_decoder_params(params, *, block_v: int = 2048, compute_dtype=jnp.bfloat16):
    """One-time weight preparation (hoisted out of the per-forward path).

    Pads the vocab axis to a multiple of the vocab tile, casts the GEMM weight to
    compute_dtype, and stores the tied embedding as (D, V_pad) so the kernel does a
    plain (tm,D)@(D,tv) contraction with no per-step transpose.
    """
    embed = jnp.asarray(params["embed"], jnp.float32)       # (V, D) f32, kept for the gather
    wenc = jnp.asarray(params["enc_proj"], jnp.float32)     # (E, D)
    bout = jnp.asarray(params["out_bias"], jnp.float32)     # (V,)
    V, D = embed.shape

    op_bytes = np.dtype(compute_dtype).itemsize
    tv = min(_round_up(block_v, 128), _round_up(V, 128))
    # Keep the double-buffered (D, tv) weight block within ~24 MiB (safe on 64 MiB v7x VMEM,
    # leaves room for a large feature/output tile on 128 MiB v5e/v6e).
    while 2 * tv * D * op_bytes > (24 << 20) and tv > 512:
        tv = max(128, _round_up(tv // 2, 128))

    V_pad = _round_up(V, tv)
    embed_t = embed.T                                       # (D, V) one-time layout change
    bias = bout
    if V_pad != V:
        embed_t = jnp.pad(embed_t, ((0, 0), (0, V_pad - V)))
        bias = jnp.pad(bias, (0, V_pad - V))

    return {
        "embed": embed,                                     # (V, D) f32 (gather / residual add)
        "enc_proj": wenc,                                   # (E, D) f32
        "embed_t_c": embed_t.astype(compute_dtype),         # (D, V_pad) bf16, padded, transposed
        "out_bias2d": bias.reshape(1, V_pad).astype(jnp.float32),
        "V": V,
        "D": D,
        "tv": tv,
        "compute_dtype": compute_dtype,
    }


def seq2seq_decoder_forward(prev_output_tokens, encoder_out, prepared, *,
                            block_m: int = 256, out_dtype=jnp.float32):
    """Mirrors Seq2SeqDecoder.forward: returns (logits, extra)."""
    embed = prepared["embed"]
    wenc = prepared["enc_proj"]
    w_t = prepared["embed_t_c"]                             # (D, V_pad) bf16
    bias2d = prepared["out_bias2d"]                         # (1, V_pad) f32
    V, D, tv = prepared["V"], prepared["D"], prepared["tv"]
    compute_dtype = prepared["compute_dtype"]
    V_pad = w_t.shape[1]

    B, T = prev_output_tokens.shape

    # ---- extract_features glue (cheap, stays in XLA) ----
    tok_emb = jnp.take(embed, prev_output_tokens, axis=0)           # (B, T, D) f32
    ctx = jnp.mean(encoder_out, axis=1) @ wenc                      # (B, D)    f32
    feats = tok_emb + ctx[:, None, :]                               # (B, T, D) f32

    # ---- row tiling (bf16 -> 16-sublane granularity; 256 rows fills the v6e/v7x MXU) ----
    BT = B * T
    tm = min(_round_up(block_m, 16), _round_up(BT, 16))
    op_bytes = np.dtype(compute_dtype).itemsize
    out_bytes = np.dtype(out_dtype).itemsize

    # ---- generation-aware VMEM budget, derived from the actual tile footprint ----
    try:
        phys_vmem = pltpu.get_tpu_info().vmem_capacity_bytes
    except Exception:  # pragma: no cover - conservative fallback if query unavailable
        phys_vmem = 64 << 20
    cap = (48 << 20) if phys_vmem <= (64 << 20) else (100 << 20)

    def _need(tm_):
        # double-buffered feature tile + weight tile + bias slice + output tile, plus headroom
        return 2 * (tm_ * D * op_bytes + tv * D * op_bytes + tv * 4 + tm_ * tv * out_bytes) \
            + (2 << 20)

    while _need(tm) > cap and tm > 64:
        tm = max(64, _round_up(tm // 2, 16))

    BT_pad = _round_up(BT, tm)
    x = feats.reshape(BT, D)
    if BT_pad != BT:
        x = jnp.pad(x, ((0, BT_pad - BT), (0, 0)))
    x = x.astype(compute_dtype)                                     # only the GEMM operand is cast

    n_row = BT_pad // tm
    n_voc = V_pad // tv

    # ---- grid ordering: pick the order that minimizes HBM re-read traffic ----
    ws_extra = (n_voc - 1) * BT_pad * D * op_bytes   # weight-stationary re-reads features
    fs_extra = (n_row - 1) * V_pad * D * op_bytes    # feature-stationary re-reads weights
    if fs_extra <= ws_extra:
        # feature-stationary: rows outermost, vocab streamed in the inner axis
        grid = (n_row, n_voc)
        x_map = lambda r, v: (r, 0)
        w_map = lambda r, v: (0, v)
        b_map = lambda r, v: (0, v)
        o_map = lambda r, v: (r, v)
    else:
        # weight-stationary: vocab outermost, each (D, tv) weight tile fetched once
        grid = (n_voc, n_row)
        x_map = lambda v, r: (r, 0)
        w_map = lambda v, r: (0, v)
        b_map = lambda v, r: (0, v)
        o_map = lambda v, r: (r, v)

    vmem_limit = int(min(max(_need(tm), 16 << 20), cap))

    logits_pad = pl.pallas_call(
        _tied_output_kernel,
        out_shape=jax.ShapeDtypeStruct((BT_pad, V_pad), out_dtype),
        grid_spec=pltpu.PrefetchScalarGridSpec(
            num_scalar_prefetch=0,
            grid=grid,
            in_specs=[
                pl.BlockSpec((tm, D), x_map),       # features row tile
                pl.BlockSpec((D, tv), w_map),       # pre-transposed embedding vocab tile
                pl.BlockSpec((1, tv), b_map),       # bias slice
            ],
            out_specs=pl.BlockSpec((tm, tv), o_map),  # lane-dense logits tile
        ),
        compiler_params=pltpu.CompilerParams(
            dimension_semantics=("parallel", "parallel"),
            vmem_limit_bytes=vmem_limit),
    )(x, w_t, bias2d)

    # TODO(synk): padded vocab columns carry logit 0 (not -inf); always slice before any softmax.
    logits = logits_pad[:BT, :V].reshape(B, T, V)
    extra = {"attn": None, "inner_states": [feats]}
    return logits, extra


def _reference_forward(prev_output_tokens, encoder_out, params):
    embed = params["embed"]
    wenc = params["enc_proj"]
    bout = params["out_bias"]
    tok_emb = jnp.take(embed, prev_output_tokens, axis=0)           # (B, T, D)
    ctx = jnp.mean(encoder_out, axis=1) @ wenc                      # (B, D)
    x = tok_emb + ctx[:, None, :]
    return x @ embed.T + bout[None, None, :]


if __name__ == "__main__":
    # Small, deterministic synthetic setup (no checkpoint loading).
    B, T, S = 2, 8, 16           # batch, decoder seq len, encoder seq len
    V, D, E = 512, 32, 32        # vocab size, decoder dim, encoder dim

    key = jax.random.PRNGKey(0)
    k_emb, k_enc, k_proj, k_bias, k_tok = jax.random.split(key, 5)

    params = {
        "embed":    (jax.random.normal(k_emb,  (V, D), jnp.float32) * 0.02),
        "enc_proj": (jax.random.normal(k_proj, (E, D), jnp.float32) * 0.02),
        "out_bias": (jax.random.normal(k_bias, (V,),   jnp.float32) * 0.02),
    }

    prev_output_tokens = jax.random.randint(k_tok, (B, T), 0, V, dtype=jnp.int32)
    encoder_out = jax.random.normal(k_enc, (B, S, E), jnp.float32)

    # block_v=256 exercises a multi-step vocab grid at this toy size; defaults suit real models.
    prepared = prepare_decoder_params(params, block_v=256)
    logits, extra = seq2seq_decoder_forward(prev_output_tokens, encoder_out, prepared,
                                            block_m=256)
    logits = jax.block_until_ready(logits)

    ref = _reference_forward(prev_output_tokens, encoder_out, params)
    assert logits.shape == (B, T, V)
    # bf16 GEMM operands with f32 accumulation; tolerance calibrated for D=32
    # (scale atol ~ sqrt(D)*eps_bf16 for larger hidden sizes).
    assert np.allclose(np.asarray(logits), np.asarray(ref), atol=2e-3, rtol=2e-2)

    print("KERNEL_OK")
</pallas_src>

<mosaic_0001>
module attributes {stable_mosaic.version = 11 : i64} {
  func.func @_tied_output_kernel(%arg0: i32, %arg1: i32, %arg2: memref<16x32xbf16, #tpu.memory_space<vmem>>, %arg3: memref<32x256xbf16, #tpu.memory_space<vmem>>, %arg4: memref<1x256xf32, #tpu.memory_space<vmem>>, %arg5: memref<16x256xf32, #tpu.memory_space<vmem>>) attributes {dimension_semantics = [#tpu.dimension_semantics<parallel>, #tpu.dimension_semantics<parallel>], iteration_bounds = array<i64: 1, 2>, scalar_prefetch = 0 : i64, scratch_operands = 0 : i64, tpu.core_type = #tpu.core_type<tc>, window_params = [{transform_indices = @transform_0, window_bounds = array<i64: 16, 32>}, {transform_indices = @transform_1, window_bounds = array<i64: 32, 256>}, {transform_indices = @transform_2, window_bounds = array<i64: 1, 256>}, {transform_indices = @transform_3, window_bounds = array<i64: 16, 256>}]} {
    %c0 = arith.constant 0 : index
    %c0_0 = arith.constant 0 : index
    %0 = vector.load %arg2[%c0, %c0_0] : memref<16x32xbf16, #tpu.memory_space<vmem>>, vector<16x32xbf16>
    %c0_1 = arith.constant 0 : index
    %c0_2 = arith.constant 0 : index
    %1 = vector.load %arg3[%c0_1, %c0_2] : memref<32x256xbf16, #tpu.memory_space<vmem>>, vector<32x256xbf16>
    %cst = arith.constant dense<0.000000e+00> : vector<16x256xf32>
    %2 = tpu.matmul %0, %1, %cst {dimension_numbers = #tpu.dot_dimension_numbers<[1], [0], [0], [1], [0, 0, 1, 1], [], []>} : vector<16x32xbf16>, vector<32x256xbf16>, vector<16x256xf32> -> vector<16x256xf32>
    %c0_3 = arith.constant 0 : index
    %c0_4 = arith.constant 0 : index
    %3 = vector.load %arg4[%c0_3, %c0_4] : memref<1x256xf32, #tpu.memory_space<vmem>>, vector<1x256xf32>
    %4 = vector.broadcast %3 : vector<1x256xf32> to vector<16x256xf32>
    %5 = arith.addf %2, %4 : vector<16x256xf32>
    %c0_5 = arith.constant 0 : index
    %c0_6 = arith.constant 0 : index
    %6 = vector.load %arg5[%c0_5, %c0_6] : memref<16x256xf32, #tpu.memory_space<vmem>>, vector<16x256xf32>
    tpu.vector_store %arg5[%c0_5, %c0_6], %5 {strides = array<i32>} : memref<16x256xf32, #tpu.memory_space<vmem>>, vector<16x256xf32>,
    return
  }
  func.func @transform_0(%arg0: i32, %arg1: i32) -> (i32, i32) {
    %c0_i32 = arith.constant 0 : i32
    %c0_i32_0 = arith.constant 0 : i32
    return %arg0, %c0_i32 : i32, i32
  }
  func.func @transform_1(%arg0: i32, %arg1: i32) -> (i32, i32) {
    %c0_i32 = arith.constant 0 : i32
    %c0_i32_0 = arith.constant 0 : i32
    return %c0_i32, %arg1 : i32, i32
  }
  func.func @transform_2(%arg0: i32, %arg1: i32) -> (i32, i32) {
    %c0_i32 = arith.constant 0 : i32
    %c0_i32_0 = arith.constant 0 : i32
    return %c0_i32, %arg1 : i32, i32
  }
  func.func @transform_3(%arg0: i32, %arg1: i32) -> (i32, i32) {
    %c0_i32 = arith.constant 0 : i32
    return %arg0, %arg1 : i32, i32
  }
}

</mosaic_0001>

<bundles_post_ra>
// kernel: tpu_custom_call.1
= control target key start
LH: loop header
LB: loop body
LE: loop exit
PB: predicated region body
PF: predicated region fallthrough
CT: control target
= control target key end

     0   :  { %8 = vsyncpa [#allocation3], 0  ;;  %s1021_s0 = inlined_call_operand.hbm [shape: bf16[16,32], index: 0, kind: input, shape index: {}]   ;;  %s1022_s1 = inlined_call_operand.hbm [shape: bf16[32,512], index: 1, kind: input, shape index: {}]   ;;  %s1023_s2 = inlined_call_operand.hbm [shape: f32[1,512], index: 2, kind: input, shape index: {}]   ;;  %s1024_s3 = inlined_call_operand.hbm [shape: f32[16,512], index: 3, kind: output, shape index: {}]  }
   0x1   :  { %9 = vsyncpa [#allocation6], 0 }
   0x2   :  { %11 = vsyncpa [#allocation6 + $0x1], 0 }
   0x3   :  { %12 = vsyncpa [#allocation4], 0 }
   0x4   :  { %14 = vsyncpa [#allocation4 + $0x1], 0  ;;  %s821_s12 = smov 0   ;;  %s823_s13 = smov 0  }
   0x5   :  { %s825_s14 = smov 0   ;;  %s827_s15 = smov 0  }
   0x6   :  { %s829_s16 = smov 0   ;;  %s831_s17 = smov 0  }
   0x7 LB: > { %s29_s18 = sadd.s32 1, %s782_s16  ;;  %s65_s19 = sadd.s32 1, %s774_s14  ;;  %s786_s17 = sphi %s831_s17, %s20_s17   ;;  %s782_s16 = sphi %s829_s16, %s1044_s16   ;;  %s778_s15 = sphi %s827_s15, %s1043_s15   ;;  %s774_s14 = sphi %s825_s14, %s1042_s14   ;;  %s770_s13 = sphi %s823_s13, %s1041_s13   ;;  %s766_s12 = sphi %s821_s12, %s1040_s12  }
   0x8   : > { %p30_p0 = scmp.ge.s32.totalorder %s29_s18, 2  ;;  %p72_p1 = scmp.ne.s32.totalorder %s774_s14, %s770_s13 }
   0x9   : > { %p73_p2 = scmp.eq.s32.totalorder %s786_s17, 0  ;;  %p552_p5 = scmp.lt.s32.totalorder %s786_s17, 2 }
   0xa   : > { %s1046_s18 = smov (%p30_p0, %s29_s18), 0  ;;  %s172_s21 = sand.u32 1, %s786_s17  }
   0xb   : > { %p74_p4 = por %p73_p2, %p72_p1  ;;  %s62_s20 = ssub.s32 %s782_s16, %s1046_s18 }
   0xc   : > { %p63_p6 = scmp.eq.s32.totalorder %s62_s20, 0  ;;  %s174_s22 = sand.u32 1, %s774_s14  }
   0xd   : > { %s523_s23 = sshll.u32 %s782_s16, 7  ;;  %s501_s25 = sshll.u32 %s174_s22, 5 }
   0xe   : > { %s869_s24 = scalar_select %p63_p6, %s774_s14, %s65_s19  }
   0xf   : > { %s182_s28 = scalar_lea.hbm %s1022_s1, %s523_s23  ;;  %p876_p7 = pnand %p552_p5, %p74_p4 }
  0x10   : > { %s176_s30 = scalar_lea.vmem [#allocation5], %s501_s25  ;;  %s880_s5 = scalar_lea.sflag [#allocation6], %s172_s21 }
  0x11   : > { %s183_s4 = sshll.u32 %s176_s30, 4  ;;  %p1026_p8 = pneg %p876_p7  ;;  %s184_s4 = int_to_ptr.vmem [resolvable:$true] %s183_s4 }
  0x12   : > { %s633_s6 = scalar_lea.vmem %s184_s4, 512  ;;  %s788_s7 = smov [#allocation5]  }
  0x13   : > { %p634_p9 = scmp.ne.s32.totalorder %s184_s4, %s633_s6  ;;  %s638_s8 = sshll.u32 %s788_s7, 4  ;;  %s639_s8 = int_to_ptr.vmem [resolvable:$false] %s638_s8 }
  0x14   : > { %s640_s9 = scalar_lea.vmem %s639_s8, 1024  ;;  %p641_p12 = scmp.lt.s32.totalorder %s184_s4, %s639_s8 }
  0x15   : > { %p636_p10 = pnand %p634_p9, %p1026_p8  ;;  %p642_p13 = scmp.lt.s32.totalorder %s640_s9, %s633_s6 }
  0x17   : > { %p637_p11 = pneg %p636_p10  ;;  %p643_p0 = por %p642_p13, %p641_p12 }
  0x19   : > { %p644_p2 = pnand %p643_p0, %p637_p11 }
  0x1b   : > { %647 = shalt.err (!%p644_p2)
}
  0x1c   : > { %s789_s10 = smov 256   ;;  %s790_s11 = smov 128  }
  0x1d   : > { %s791_s19 = smov 8   ;;  %s891_s20 = sadd.s32 4294967295, %s786_s17  }
  0x1e   : > { %543 = dma.hbm_to_vmem [thread:$0]  (!%p876_p7), %s182_s28, 512, %s184_s4, %s880_s5, %s789_s10, %s790_s11, %s791_s19  }
  0x1f   : > { %s497_s21 = sadd.s32 4294967294, %s786_s17   ;;  %p78_p4 = scmp.ne.s32.totalorder %s770_s13, %s766_s12 }
  0x20   : > { %p1025_p5 = scmp.eq.s32.totalorder %s891_s20, 0  ;;  %p130_p6 = scmp.eq.s32.totalorder %s891_s20, 1 }
  0x21   : > { %p136_p9 = scmp.eq.s32.totalorder %s497_s21, 1  ;;  %p498_p11 = scmp.ge.s32.totalorder %s786_s17, 1 }
  0x22   : > { %p900_p10 = por %p1025_p5, %p78_p4  ;;  %p908_p12 = por %p130_p6, %p72_p1 }
  0x23   : > { %p912_p13 = por %p136_p9, %p78_p4  ;;  %p143_p0 = scmp.lt.s32.totalorder %s786_s17, 3 }
  0x24   : > { %s1030_s25 = scalar_select %p908_p12, 1, 0 }
  0x25   : > { %s1031_s26 = scalar_select %p912_p13, 1, 0 }
  0x26   : > { %p917_p2 = pnand %p498_p11, %p143_p0  ;;  %s792_s28 = smov [#allocation2]  }
  0x27   : > { %s158_s30 = sshll.u32 %s792_s28, 4  ;;  %s504_s4 = sshll.u32 %s174_s22, 1  ;;  %s159_s30 = int_to_ptr.vmem [resolvable:$true] %s158_s30 }
  0x28   : > { %p536_p3 = pneg %p917_p2  ;;  %s524_s6 = sshll.u32 %s782_s16, 5 }
  0x29   : > { %s935_s10 = scalar_lea.hbm %s1023_s2, %s524_s6  ;;  %s197_s11 = scalar_lea.vmem [#allocation7], %s504_s4 }
  0x2a   : > { %p928_p1 = pnand %p536_p3, %p1025_p5  ;;  %s205_s19 = sshll.u32 %s197_s11, 4  ;;  %s206_s19 = int_to_ptr.vmem [resolvable:$true] %s205_s19 }
  0x2b   : > { %s659_s21 = scalar_lea.vmem %s159_s30, 128  ;;  %p667_p0 = scmp.lt.s32.totalorder %s159_s30, %s159_s30 }
  0x2c   : > { %p650_p4 = pneg %p928_p1  ;;  %p660_p6 = scmp.ne.s32.totalorder %s159_s30, %s659_s21 }
  0x2d   : > { %p668_p3 = scmp.lt.s32.totalorder %s659_s21, %s659_s21 }
  0x2e   : > { %p662_p9 = pnand %p660_p6, %p650_p4 }
  0x2f   : > { %p669_p5 = por %p668_p3, %p667_p0 }
  0x30   : > { %p663_p11 = pneg %p662_p9 }
  0x32   : > { %p670_p8 = pnand %p669_p5, %p663_p11 }
  0x34   : > { %673 = shalt.err (!%p670_p8)
}
  0x35   : > { %s793_s22 = smov 64   ;;  %s794_s28 = smov 4  }
  0x36   : > { %539 = dma.hbm_to_vmem [thread:$0]  (!%p928_p1), %s1021_s0, 128, %s159_s30, [#allocation3], %s793_s22, %s793_s22, %s794_s28  }
  0x37   : > { %s687_s8 = scalar_lea.vmem %s206_s19, 32  ;;  %p1034_p12 = pneg %p876_p7 }
  0x38   : > { %p688_p13 = scmp.ne.s32.totalorder %s206_s19, %s687_s8  ;;  %s795_s9 = smov [#allocation7]  }
  0x39   : > { %s692_s11 = sshll.u32 %s795_s9, 4  ;;  %s693_s11 = int_to_ptr.vmem [resolvable:$false] %s692_s11 }
  0x3a   : > { %p690_p4 = pnand %p688_p13, %p1034_p12  ;;  %s694_s21 = scalar_lea.vmem %s693_s11, 64 }
  0x3b   : > { %p695_p8 = scmp.lt.s32.totalorder %s206_s19, %s693_s11  ;;  %p696_p5 = scmp.lt.s32.totalorder %s694_s21, %s687_s8 }
  0x3c   : > { %p691_p6 = pneg %p690_p4 }
  0x3d   : > { %p697_p9 = por %p696_p5, %p695_p8 }
  0x3f   : > { %p698_p11 = pnand %p697_p9, %p691_p6 }
  0x41   : > { %701 = shalt.err (!%p698_p11)
}
  0x42   : > { %546 = dma.hbm_to_vmem [thread:$0]  (!%p876_p7), %s935_s10, 32, %s206_s19, %s880_s5  }
  0x43   : > { %214 = sbr.rel (%p917_p2) target bundleno = 302 (0x12e), region = 32  ;;  %p1035_p12 = scmp.eq.s32.totalorder (!%p917_p2), %s891_s20, 0 }
  0x48   : > { %753 = dma.done.wait (%p1035_p12), [#allocation3], 128   ;;  %p1036_p13 = pmov %p1035_p12 }
  0x49   : > { %s220_s30 = sand.u32 1, %s891_s20   ;;  %s959_s7 = sand.u32 1, %s770_s13  }
  0x4a   : > { %755 = vsyncadd (%p1036_p13), [#allocation3], 4294967168  ;;  %s509_s29 = sshll.u32 %s959_s7, 5  ;;  %s221_s22 = scalar_lea.sflag [#allocation6], %s220_s30 }
  0x4b   : > { %s224_s28 = scalar_lea.vmem [#allocation5], %s509_s29 }
  0x4c   : > { %757 = dma.done.wait (%p900_p10), %s221_s22, 544  }
  0x4d   : > { %759 = vsyncadd (%p900_p10), %s221_s22, 4294966752  ;;  %v796_v0 = vmov 0   ;;  %v613_v1 = vld [vmem:[%s224_s28 + $0x14] ss:$8 sps:$4 sm:$0xff]   ;;  %v615_v2 = vld [vmem:[%s224_s28 + $0x10] ss:$8 sps:$4 sm:$0xff]   ;;  %v275_v6 = vlaneseq }
  0x4e   : > { %346 = vmatprep.mubr.bf16.mxu0 %v796_v0  ;;  %326 = vmatprep.subr.bf16.mxu0 %v613_v1  ;;  %v616_v3 = vld [vmem:[%s224_s28 + $0x4] ss:$8 sps:$4 sm:$0xff]   ;;  %v618_v4 = vld [vmem:[%s224_s28] ss:$8 sps:$4 sm:$0xff]   ;;  %v619_v5 = vld [vmem:[#allocation2] sm:$0xff]   ;;  %vm310_vm0 = vcmask 261120  }
  0x4f   : > { %327 = vmatpush1.bf16.msra.mxu0 %v615_v2  ;;  %s510_s5 = sshll.u32 %s959_s7, 1  ;;  %v276_v7 = vshrl.u32 %v275_v6, 7  ;;  %s260_s23 = scalar_lea.vmem [#allocation8], %s509_s29 }
  0x50   : > { %328 = vmatprep.subr.bf16.mxu0 %v616_v3  ;;  %s233_s20 = scalar_lea.vmem [#allocation7], %s510_s5  ;;  %s378_s27 = sshll.u32 %s260_s23, 4  ;;  %s968_s27 = int_to_ptr.vmem [resolvable:$true] %s378_s27 }
  0x51   : > { %v277_v8 = vsub.s32 0, %v276_v7  ;;  %v273_v9 = vld [vmem:[%s233_s20] sm:$0x3]  ;;  %v281_v10 = vsub.s32 1, %v276_v7  ;;  %s525_s10 = sshll.u32 %s778_s15, 8  ;;  %s362_s8 = scalar_lea.sflag [#allocation4], %s959_s7 }
  0x52   : > { %s973_s4 = scalar_lea.hbm %s1024_s3, %s525_s10  ;;  %s702_s9 = scalar_lea.vmem %s968_s27, 512 }
  0x53   : > { %329 = vmatpush1.bf16.msra.mxu0 %v618_v4  ;;  %v278_v11 = vrot.slane %v273_v9, %v277_v8  ;;  %v282_v12 = vrot.slane %v273_v9, %v281_v10  ;;  %p703_p7 = scmp.ne.s32.totalorder %s968_s27, %s702_s9  ;;  %p1037_p10 = scmp.ne.s32.totalorder %s1030_s25, 0 }
  0x54   : > { %s797_s15 = smov [#allocation8]  }
  0x55   : > { %p704_p2 = pnand %p703_p7, %p1037_p10  ;;  %s706_s11 = sshll.u32 %s797_s15, 4  ;;  %s707_s11 = int_to_ptr.vmem [resolvable:$false] %s706_s11 }
  0x56   : > { %517 = vmatmul.mubr.msk.bf16.vlgmr.msra.gmra.mxu0 %vm310_vm0, %v619_v5  ;;  %s708_s21 = scalar_lea.vmem %s707_s11, 1024  ;;  %p709_p0 = scmp.lt.s32.totalorder %s968_s27, %s707_s11 }
  0x57   : > { %p705_p1 = pneg %p704_p2  ;;  %p710_p3 = scmp.lt.s32.totalorder %s708_s21, %s702_s9 }
  0x59   : > { %p711_p4 = por %p710_p3, %p709_p0 }
  0x5b   : > { %p712_p6 = pnand %p711_p4, %p705_p1 }
 0x116   : > { %v348_v13 = vpop.f32.mrf.mxu0 }
 0x117   : > { %v349_v14 = vadd.f32 %v348_v13, %v278_v11 }
 0x118   : > { %v350_v15 = vpop.f32.mrf.mxu0 }
 0x119   : > { %357 = vst [vmem:[%s260_s23] sm:$0xff] %v349_v14  ;;  %v351_v16 = vadd.f32 %v350_v15, %v282_v12 }
 0x11a   : > { %v352_v17 = vpop.f32.mrf.mxu0 }
 0x11b   : > { %358 = vst [vmem:[%s260_s23 + $0x8] sm:$0xff] %v351_v16  ;;  %v353_v18 = vadd.f32 %v352_v17, %v278_v11 }
 0x11c   : > { %v354_v19 = vpop.f32.mrf.mxu0 }
 0x11d   : > { %359 = vst [vmem:[%s260_s23 + $0x10] sm:$0xff] %v353_v18  ;;  %v355_v20 = vadd.f32 %v354_v19, %v282_v12 }
 0x11f   : > { %360 = vst [vmem:[%s260_s23 + $0x18] sm:$0xff] %v355_v20 }
 0x120   : > { %715 = shalt.err (!%p712_p6)
}
 0x121   : > { %s716_s30 = scalar_lea.hbm %s973_s4, 512  ;;  %s720_s28 = scalar_lea.hbm %s1024_s3, 1024 }
 0x122   : > { %p717_p8 = scmp.ne.s32.totalorder %s973_s4, %s716_s30  ;;  %p721_p11 = scmp.lt.s32.totalorder %s973_s4, %s1024_s3 }
 0x123   : > { %p722_p12 = scmp.lt.s32.totalorder %s720_s28, %s716_s30 }
 0x124   : > { %p718_p5 = pnand %p717_p8, %p1037_p10 }
 0x125   : > { %p723_p13 = por %p722_p12, %p721_p11 }
 0x126   : > { %p719_p9 = pneg %p718_p5 }
 0x128   : > { %p724_p7 = pnand %p723_p13, %p719_p9 }
 0x12a   : > { %727 = shalt.err (!%p724_p7)
}
 0x12b   : > { %s798_s23 = smov 256   ;;  %s799_s10 = smov 512  }
 0x12c   : > { %s800_s19 = smov 16  }
 0x12d   : > { %534 = dma.vmem_to_hbm [thread:$0]  (%p1037_p10), %s968_s27, 512, %s973_s4, %s362_s8, %s798_s23, %s799_s10, %s800_s19  }
 0x12e PF: > { %s393_s6 = sand.u32 1, %s766_s12   ;;  %p1038_p2 = scmp.ne.s32.totalorder %s1031_s26, 0 }
 0x12f   : > { %p1039_p1 = scmp.ge.s32.totalorder %s786_s17, 2  ;;  %s394_s9 = scalar_lea.sflag [#allocation4], %s393_s6 }
 0x131   : > { %p548_p0 = pnand %p1039_p1, %p1038_p2 }
 0x133   : > { %p549_p3 = pneg %p548_p0 }
 0x135   : > { %761 = dma.done.wait (%p549_p3), %s394_s9, 512  }
 0x136   : > { %763 = vsyncadd (%p549_p3), %s394_s9, 4294966784  ;;  %s20_s17 = sadd.s32 1, %s786_s17   ;;  %s1040_s12 = smov %s770_s13 }
 0x137   : > { %p17_p4 = scmp.ge.s32.totalorder %s20_s17, 4   ;;  %s1041_s13 = smov %s774_s14 }
 0x138   : > { %s1042_s14 = smov %s869_s24  ;;  %s1043_s15 = smov %s782_s16 }
 0x139   : > { %s1044_s16 = smov %s1046_s18  ;;  %19 = sbr.rel (!%p17_p4) target bundleno = 7 (0x7), region = 94 }
 0x13e   :  { %399 = vsyncpa [#allocation3], 1 }
 0x13f   :  { %401 = vsyncpa [#allocation3 + $0x1], 1 }
 0x140   :  { %402 = vsyncpa [#allocation6], 1 }
 0x141   :  { %404 = vsyncpa [#allocation6 + $0x1], 1 }
 0x142   :  { %405 = vsyncpa [#allocation4], 1 }
 0x143   :  { %407 = vsyncpa [#allocation4 + $0x1], 1 }

</bundles_post_ra>
